<compile_context>
chip_gen: v5e
topology: v5e:2x2
jax: 0.10.0
libtpu: 0.0.40
codegen_flags: <defaults>
</compile_context>

<pallas_src>
import math
import functools

import numpy as np
import jax
import jax.numpy as jnp
from jax.experimental import pallas as pl
from jax.experimental.pallas import tpu as pltpu


def build_pe_table(d_model: int, max_seq_len: int = 151) -> jnp.ndarray:
    """Positional-encoding buffer (max_seq_len, d_model), same math as the module."""
    assert d_model % 2 == 0, "PositionalEncoder requires an even d_model"
    pe = np.zeros((max_seq_len, d_model), dtype=np.float64)
    pos = np.arange(max_seq_len, dtype=np.float64)[:, None]
    i_even = np.arange(0, d_model, 2, dtype=np.float64)[None, :]
    pe[:, 0::2] = np.sin(pos / 10000.0 ** (2.0 * i_even / d_model))
    pe[:, 1::2] = np.cos(pos / 10000.0 ** (2.0 * (i_even + 1.0) / d_model))
    return jnp.asarray(pe.astype(np.float32))


def _pos_enc_kernel(x_ref, pe_ref, o_ref, *, scale):
    # x_ref/o_ref: (bt, nt) lane-dense tile; pe_ref: (1, nt) shared row.
    x = x_ref[...].astype(jnp.float32)
    pe = pe_ref[...].astype(jnp.float32)           # broadcasts over the bt rows
    o_ref[...] = (x * scale + pe).astype(o_ref.dtype)


def _sublane_multiple(dtype) -> int:
    # Packed-sublane tile: 8 rows for 4-byte, 16 for 2-byte, 32 for 1-byte dtypes.
    itemsize = jnp.dtype(dtype).itemsize
    return max(8, 32 // max(itemsize, 1))


def _num_tensorcores() -> int:
    """Best-effort TensorCore count per chip; default to 2 (v7x-safe)."""
    try:
        info = pltpu.get_tpu_info()
        for name in ("num_cores", "core_count", "num_tensorcores",
                     "tensorcore_count", "cores_per_chip"):
            v = getattr(info, name, None)
            if isinstance(v, int) and v > 0:
                return v
    except Exception:
        pass
    return 2


def _round_up(x: int, m: int) -> int:
    return ((x + m - 1) // m) * m


def _pick_tiles(num_rows: int, n: int, itemsize: int, sub: int,
                num_cores: int, target_bytes: int = 6 << 20):
    """Return (bt, nt): rows and lane-columns per block."""
    row_bytes = n * itemsize
    total_bytes = num_rows * row_bytes

    if total_bytes <= target_bytes:
        # Whole problem fits in one comfortable block.  Only split it when the
        # chip has >1 TensorCore AND there are enough packed-sublane row groups
        # to split without masked stores; otherwise keep a single block
        # (splitting on a 1-TC chip just adds a ~0.35 us grid step).
        if num_cores >= 2 and num_rows >= 2 * sub:
            bt = _round_up(pl.cdiv(num_rows, num_cores), sub)
        else:
            bt = num_rows
        return bt, n

    if row_bytes * sub <= target_bytes:
        # Tile rows only; keep full lane-dense rows per block.
        bt = (target_bytes // row_bytes) // sub * sub      # >= sub by construction
        return bt, n

    # Rows are huge: also tile the lane dimension in 128-multiples so a block
    # never exceeds the target (keeps double-buffered VMEM bounded everywhere,
    # and gives both v7x TCs work even when B is tiny).
    bt = sub if num_rows >= sub else num_rows
    nt = (target_bytes // (bt * itemsize)) // 128 * 128
    nt = max(128, min(nt, (n // 128) * 128))
    return bt, nt


def positional_encoder(x: jnp.ndarray, pe_table: jnp.ndarray, *,
                       donate_x: bool = False,
                       target_block_bytes: int = 6 << 20) -> jnp.ndarray:
    """x: (B, S, D).  pe_table: (max_seq_len, D) float32.

    Set donate_x=True only when the caller actually donates x (otherwise XLA
    inserts a defensive copy that doubles this kernel's HBM traffic).
    """
    B, S, D = x.shape
    max_seq_len, d_model = pe_table.shape
    if S > max_seq_len:
        raise ValueError(f"seq_len {S} exceeds max_seq_len {max_seq_len}")
    if D != d_model:
        raise ValueError(f"d_model mismatch: x has {D}, pe table has {d_model}")

    scale = math.sqrt(D)
    N = S * D

    # Lane-dense views: stores are full-width vst's (modulo a non-128 tail).
    x2 = x.reshape(B, N)
    pe2 = pe_table[:S, :].reshape(1, N)            # stays f32 for the compute

    itemsize = jnp.dtype(x.dtype).itemsize
    sub = _sublane_multiple(x.dtype)
    num_cores = _num_tensorcores()
    bt, nt = _pick_tiles(B, N, itemsize, sub, num_cores, target_block_bytes)
    grid = (pl.cdiv(B, bt), pl.cdiv(N, nt))

    kernel = functools.partial(_pos_enc_kernel, scale=scale)

    out2 = pl.pallas_call(
        kernel,
        out_shape=jax.ShapeDtypeStruct((B, N), x.dtype),
        grid_spec=pltpu.PrefetchScalarGridSpec(
            num_scalar_prefetch=0,
            grid=grid,
            in_specs=[
                pl.BlockSpec((bt, nt), lambda r, c: (r, c)),   # x tile
                pl.BlockSpec((1, nt), lambda r, c: (0, c)),    # pe row chunk
            ],
            out_specs=pl.BlockSpec((bt, nt), lambda r, c: (r, c)),
        ),
        compiler_params=pltpu.CompilerParams(
            dimension_semantics=("parallel", "parallel"),
            vmem_limit_bytes=40 * 1024 * 1024,
        ),
        input_output_aliases=({0: 0} if donate_x else {}),
    )(x2, pe2)

    return out2.reshape(B, S, D)


if __name__ == "__main__":
    # Small shapes consistent with the module: batch=2, seq=8, d_model=32.
    B, S, D = 2, 8, 32
    key = jax.random.PRNGKey(0)
    x = jax.random.normal(key, (B, S, D), dtype=jnp.float32)

    pe_table = build_pe_table(d_model=D, max_seq_len=151)

    # Reference (pure jnp).
    ref = x * math.sqrt(D) + pe_table[:S, :][None, :, :]
    ref = jax.block_until_ready(ref)

    out = positional_encoder(x, pe_table)   # donate_x defaults to False: no aliasing
    out = jax.block_until_ready(out)

    np.testing.assert_allclose(np.asarray(out), np.asarray(ref), rtol=1e-6, atol=1e-6)

    print("KERNEL_OK")
</pallas_src>

<mosaic_0001>
module attributes {stable_mosaic.version = 11 : i64} {
  func.func @_pos_enc_kernel(%arg0: i32, %arg1: i32, %arg2: memref<2x256xf32, #tpu.memory_space<vmem>>, %arg3: memref<1x256xf32, #tpu.memory_space<vmem>>, %arg4: memref<2x256xf32, #tpu.memory_space<vmem>>) attributes {dimension_semantics = [#tpu.dimension_semantics<parallel>, #tpu.dimension_semantics<parallel>], iteration_bounds = array<i64: 1, 1>, scalar_prefetch = 0 : i64, scratch_operands = 0 : i64, tpu.core_type = #tpu.core_type<tc>, window_params = [{transform_indices = @transform_0, window_bounds = array<i64: 2, 256>}, {transform_indices = @transform_1, window_bounds = array<i64: 1, 256>}, {transform_indices = @transform_2, window_bounds = array<i64: 2, 256>}]} {
    %c0 = arith.constant 0 : index
    %c0_0 = arith.constant 0 : index
    %0 = vector.load %arg2[%c0, %c0_0] : memref<2x256xf32, #tpu.memory_space<vmem>>, vector<2x256xf32>
    %c0_1 = arith.constant 0 : index
    %c0_2 = arith.constant 0 : index
    %1 = vector.load %arg3[%c0_1, %c0_2] : memref<1x256xf32, #tpu.memory_space<vmem>>, vector<1x256xf32>
    %cst = arith.constant 5.65685415 : f32
    %2 = vector.broadcast %cst : f32 to vector<2x256xf32>
    %3 = arith.mulf %0, %2 : vector<2x256xf32>
    %4 = vector.broadcast %1 : vector<1x256xf32> to vector<2x256xf32>
    %5 = arith.addf %3, %4 : vector<2x256xf32>
    %c0_3 = arith.constant 0 : index
    %c0_4 = arith.constant 0 : index
    %6 = vector.load %arg4[%c0_3, %c0_4] : memref<2x256xf32, #tpu.memory_space<vmem>>, vector<2x256xf32>
    tpu.vector_store %arg4[%c0_3, %c0_4], %5 {strides = array<i32>} : memref<2x256xf32, #tpu.memory_space<vmem>>, vector<2x256xf32>,
    return
  }
  func.func @transform_0(%arg0: i32, %arg1: i32) -> (i32, i32) {
    %c0_i32 = arith.constant 0 : i32
    return %arg0, %arg1 : i32, i32
  }
  func.func @transform_1(%arg0: i32, %arg1: i32) -> (i32, i32) {
    %c0_i32 = arith.constant 0 : i32
    %c0_i32_0 = arith.constant 0 : i32
    return %c0_i32, %arg1 : i32, i32
  }
  func.func @transform_2(%arg0: i32, %arg1: i32) -> (i32, i32) {
    %c0_i32 = arith.constant 0 : i32
    return %arg0, %arg1 : i32, i32
  }
}

</mosaic_0001>

<bundles_post_ra>
// kernel: tpu_custom_call.1
= control target key start
LH: loop header
LB: loop body
LE: loop exit
PB: predicated region body
PF: predicated region fallthrough
CT: control target
= control target key end

     0   :  { %7 = vsyncpa [#allocation3], 0  ;;  %s178_s0 = inlined_call_operand.hbm [shape: f32[2,256], index: 0, kind: input, shape index: {}]   ;;  %s179_s1 = inlined_call_operand.hbm [shape: f32[1,256], index: 1, kind: input, shape index: {}]   ;;  %s180_s2 = inlined_call_operand.hbm [shape: f32[2,256], index: 2, kind: output, shape index: {}]  }
   0x1   :  { %8 = vsyncpa [#allocation6], 0 }
   0x2   :  { %9 = vsyncpa [#allocation4], 0  ;;  %s15_s11 = sshll.u32 %s178_s0, 4  ;;  %s151_s12 = smov [#allocation2]   ;;  %s16_s11 = int_to_ptr.hbm [resolvable:$true] %s15_s11 }
   0x3   :  { %s17_s13 = sshll.u32 %s151_s12, 4  ;;  %s26_s16 = sshll.u32 %s179_s1, 4  ;;  %s18_s13 = int_to_ptr.vmem [resolvable:$true] %s17_s13  ;;  %s27_s16 = int_to_ptr.hbm [resolvable:$true] %s26_s16 }
   0x4   :  { %20 = dma.hbm_to_vmem [thread:$0]  %s16_s11, 64, %s18_s13, [#allocation3]  }
   0x5   :  { %s152_s17 = smov [#allocation5]  }
   0x6   :  { %s28_s18 = sshll.u32 %s152_s17, 4  ;;  %s29_s18 = int_to_ptr.vmem [resolvable:$true] %s28_s18 }
   0x7   :  { %31 = dma.hbm_to_vmem [thread:$0]  %s27_s16, 32, %s29_s18, [#allocation6]  }
   0x8   :  { %145 = dma.done.wait [#allocation3], 64  }
   0x9   :  { %146 = vsyncadd [#allocation3], 4294967232 }
   0xa   :  { %147 = dma.done.wait [#allocation6], 32  }
   0xb   :  { %148 = vsyncadd [#allocation6], 4294967264  ;;  %v40_v0 = vld [vmem:[#allocation2] sm:$0xf]  ;;  %v41_v1 = vld [vmem:[#allocation5] sm:$0x3] }
   0xc   :  { %v44_v2 = vperm.slane %v41_v1, 0  ;;  %v45_v3 = vperm.slane %v41_v1, 1  ;;  %v42_v4 = vmul.f32 5.656854, %v40_v0  ;;  %vm47_vm0 = vcmask 1041408   ;;  %s153_s0 = smov [#allocation7]  }
   0xd   :  { %s57_s19 = sshll.u32 %s153_s0, 4  ;;  %s59_s21 = sshll.u32 %s180_s2, 4  ;;  %s58_s19 = int_to_ptr.vmem [resolvable:$true] %s57_s19  ;;  %s60_s21 = int_to_ptr.hbm [resolvable:$true] %s59_s21 }
   0xe   :  { %v46_v5 = vrot.slane %v45_v3, 6 }
  0x10   :  { %v48_v6 = vsel %vm47_vm0, %v44_v2, %v46_v5 }
  0x11   :  { %v50_v7 = vadd.f32 %v48_v6, %v42_v4 }
  0x13   :  { %51 = vst [vmem:[#allocation7] sm:$0xf] %v50_v7 }
  0x14   :  { %62 = dma.vmem_to_hbm [thread:$0]  %s58_s19, 64, %s60_s21, [#allocation4]  }
  0x15   :  { %149 = dma.done.wait [#allocation4], 64  }
  0x16   :  { %150 = vsyncadd [#allocation4], 4294967232 }
  0x17   :  { %67 = vsyncpa [#allocation3], 1 }
  0x18   :  { %68 = vsyncpa [#allocation6], 1 }
  0x19   :  { %69 = vsyncpa [#allocation4], 1 }

</bundles_post_ra>
